<compile_context>
chip_gen: v5e
topology: v5e:2x2
jax: 0.10.0
libtpu: 0.0.40
codegen_flags: <defaults>
</compile_context>

<pallas_src>
import functools

import jax
import jax.numpy as jnp
from jax import lax
from jax.experimental import pallas as pl
from jax.experimental.pallas import tpu as pltpu


_MAX_ROWS = 512                      # 512*512*4B = 1 MiB per f32 buffer
_LANE_CANDIDATES = (512, 256, 128)   # lane-dense widths tried before padding
_FALLBACK_LANE = 512


def _cdiv(a, b):
    return -(-a // b)


def _round_up(x, m):
    return ((x + m - 1) // m) * m


def _focal_elementwise(x, t, alpha, gamma, logits):
    """Per-element focal loss, computed in float32."""
    x = x.astype(jnp.float32)
    t = t.astype(jnp.float32)
    if logits:
        # numerically stable binary_cross_entropy_with_logits, reduction='none'
        bce = jnp.maximum(x, 0.0) - x * t + jnp.log1p(jnp.exp(-jnp.abs(x)))
    else:
        # plain BCE on probabilities; clamp logs at -100 like PyTorch
        log_x = jnp.maximum(jnp.log(x), -100.0)
        log_1mx = jnp.maximum(jnp.log(1.0 - x), -100.0)
        bce = -(t * log_x + (1.0 - t) * log_1mx)

    pt = jnp.exp(-bce)
    one_minus_pt = 1.0 - pt

    gamma_f = float(gamma)
    if gamma_f.is_integer() and gamma_f >= 0.0:
        # integer-gamma specialization: VPU multiplies, no EUP exp/log
        ig = int(gamma_f)
        if ig == 0:
            modulator = jnp.ones_like(one_minus_pt)
        else:
            modulator = one_minus_pt
            for _ in range(ig - 1):
                modulator = modulator * one_minus_pt
    else:
        # fractional gamma: clamp base >= 0 so fp rounding (pt = 1 + eps) can't NaN
        modulator = jnp.power(jnp.maximum(one_minus_pt, 0.0), gamma_f)

    return float(alpha) * modulator * bce


def _block_partial_sum(loss):
    """Reduce a (block_rows, lane) f32 block to an (8, lane) partial sum.

    8-row slices are (8,128)-tile aligned, so this is pure vreg-wise VALU adds
    (no cross-lane/sublane XLU work, no serializing scalar accumulate).
    """
    acc = loss[0:8, :]
    for r in range(8, loss.shape[0], 8):
        acc = acc + loss[r:r + 8, :]
    return acc


def _map_kernel(x_ref, t_ref, o_ref, *, alpha, gamma, logits):
    loss = _focal_elementwise(x_ref[...], t_ref[...], alpha, gamma, logits)
    o_ref[...] = loss.astype(o_ref.dtype)


def _sum_kernel(x_ref, t_ref, o_ref, *, alpha, gamma, logits,
                steps, full_blocks, rem_elems, lane, needs_mask):
    c = pl.program_id(0)          # chunk ("parallel") axis
    j = pl.program_id(1)          # reduction ("arbitrary") axis
    lin = c * steps + j           # linear block index (small; no overflow risk)

    @pl.when(j == 0)
    def _():
        o_ref[...] = jnp.zeros_like(o_ref)

    loss = _focal_elementwise(x_ref[...], t_ref[...], alpha, gamma, logits)

    if not needs_mask:
        o_ref[...] += _block_partial_sum(loss)
    else:
        # Steady-state blocks: no masking cost at all.
        @pl.when(lin < full_blocks)
        def _():
            o_ref[...] += _block_partial_sum(loss)

        # Only the block straddling the end of the valid data (and any fully
        # padded / out-of-bounds blocks after it) pay for the mask.  All index
        # math is block-local int32 (< block_rows*lane), so no i32 overflow.
        @pl.when(lin >= full_blocks)
        def _():
            valid = jnp.where(lin == full_blocks, rem_elems, 0)
            row = lax.broadcasted_iota(jnp.int32, loss.shape, 0)
            col = lax.broadcasted_iota(jnp.int32, loss.shape, 1)
            local = row * lane + col
            o_ref[...] += _block_partial_sum(jnp.where(local < valid, loss, 0.0))


def focal_loss(inputs, targets, alpha=1.0, gamma=2.0, logits=False, reduce=True):
    """Pallas TPU implementation of FocalLoss.forward."""
    assert inputs.shape == targets.shape
    orig_shape = inputs.shape
    n = int(inputs.size)

    # Pick a lane-dense width that divides n so flatten+reshape is copy-free
    # (no wrapper-side jnp.pad -> no extra HBM round trip).
    lane = None
    for cand in _LANE_CANDIDATES:
        if n % cand == 0:
            lane = cand
            break
    padded = lane is None
    if padded:
        lane = _FALLBACK_LANE

    x_flat = inputs.reshape(-1)
    t_flat = targets.reshape(-1)
    rows = _cdiv(n, lane)
    if padded:
        total = rows * lane
        pad_val = 0.0 if logits else 0.5   # finite loss for padded elems (masked anyway)
        x_flat = jnp.pad(x_flat, (0, total - n), constant_values=pad_val)
        t_flat = jnp.pad(t_flat, (0, total - n), constant_values=pad_val)
    x2 = x_flat.reshape(rows, lane)
    t2 = t_flat.reshape(rows, lane)

    block_rows = min(_MAX_ROWS, _round_up(rows, 8))
    num_blocks = _cdiv(rows, block_rows)
    block_elems = block_rows * lane

    if not reduce:
        blk = pl.BlockSpec((block_rows, lane), lambda i: (i, 0))
        kernel = functools.partial(_map_kernel, alpha=alpha, gamma=gamma, logits=logits)
        out2d = pl.pallas_call(
            kernel,
            out_shape=jax.ShapeDtypeStruct((rows, lane), inputs.dtype),
            grid_spec=pltpu.PrefetchScalarGridSpec(
                num_scalar_prefetch=0,
                grid=(num_blocks,),
                in_specs=[blk, blk],
                out_specs=blk,
            ),
            compiler_params=pltpu.CompilerParams(
                dimension_semantics=("parallel",)),
        )(x2, t2)
        if padded:
            return out2d.reshape(-1)[:n].reshape(orig_shape)
        return out2d.reshape(orig_shape)   # free reshape, no slice copy

    # reduce=True: fused partial-sum kernel with megacore-friendly 2-D grid.
    num_chunks = 2 if num_blocks >= 2 else 1
    steps = _cdiv(num_blocks, num_chunks)
    total_blocks = num_chunks * steps
    full_blocks = n // block_elems         # blocks fully covered by valid elements
    rem_elems = n % block_elems            # valid elements in the straddling block
    needs_mask = (total_blocks * block_elems) != n

    kernel = functools.partial(
        _sum_kernel, alpha=alpha, gamma=gamma, logits=logits,
        steps=steps, full_blocks=full_blocks, rem_elems=rem_elems,
        lane=lane, needs_mask=needs_mask)

    in_blk = pl.BlockSpec((block_rows, lane), lambda c, j: (c * steps + j, 0))
    out_blk = pl.BlockSpec((8, lane), lambda c, j: (c, 0))   # resident across j

    partials = pl.pallas_call(
        kernel,
        out_shape=jax.ShapeDtypeStruct((num_chunks * 8, lane), jnp.float32),
        grid_spec=pltpu.PrefetchScalarGridSpec(
            num_scalar_prefetch=0,
            grid=(num_chunks, steps),
            in_specs=[in_blk, in_blk],
            out_specs=out_blk,
        ),
        compiler_params=pltpu.CompilerParams(
            dimension_semantics=("parallel", "arbitrary")),
    )(x2, t2)

    # Tiny final reduce + 1/n scale on a (num_chunks*8, lane) array.
    return (jnp.sum(partials) * (1.0 / n)).astype(inputs.dtype)


def _reference(inputs, targets, alpha, gamma, logits, reduce):
    x = inputs.astype(jnp.float32)
    t = targets.astype(jnp.float32)
    if logits:
        bce = jnp.maximum(x, 0.0) - x * t + jnp.log1p(jnp.exp(-jnp.abs(x)))
    else:
        bce = -(t * jnp.maximum(jnp.log(x), -100.0)
                + (1.0 - t) * jnp.maximum(jnp.log(1.0 - x), -100.0))
    pt = jnp.exp(-bce)
    f = alpha * (1.0 - pt) ** gamma * bce
    return jnp.mean(f) if reduce else f


if __name__ == "__main__":
    B, C, H, W = 2, 4, 16, 16
    key = jax.random.PRNGKey(0)
    k1, k2, k3, k4, k5 = jax.random.split(key, 5)

    logits_in = jax.random.normal(k1, (B, C, H, W), dtype=jnp.float32)
    probs_in = jax.nn.sigmoid(jax.random.normal(k2, (B, C, H, W), dtype=jnp.float32))
    targets = jax.random.bernoulli(k3, 0.3, (B, C, H, W)).astype(jnp.float32)

    # 1) logits=True, reduce=False, integer gamma (common detection setting)
    out1 = jax.block_until_ready(
        focal_loss(logits_in, targets, alpha=0.25, gamma=2.0, logits=True, reduce=False))
    ref1 = _reference(logits_in, targets, 0.25, 2.0, True, False)
    assert out1.shape == (B, C, H, W)
    assert jnp.allclose(out1, ref1, atol=1e-5, rtol=1e-5), "mismatch (map, logits)"

    # 2) module defaults: alpha=1, gamma=2, logits=False, reduce=True (fused mean)
    out2 = jax.block_until_ready(
        focal_loss(probs_in, targets, alpha=1.0, gamma=2.0, logits=False, reduce=True))
    ref2 = _reference(probs_in, targets, 1.0, 2.0, False, True)
    assert jnp.allclose(out2, ref2, atol=1e-5, rtol=1e-5), "mismatch (mean, probs)"

    # 3) fractional gamma path (EUP power), fused mean
    out3 = jax.block_until_ready(
        focal_loss(logits_in, targets, alpha=1.0, gamma=1.5, logits=True, reduce=True))
    ref3 = _reference(logits_in, targets, 1.0, 1.5, True, True)
    assert jnp.allclose(out3, ref3, atol=1e-5, rtol=1e-5), "mismatch (mean, frac gamma)"

    # 4) ragged / non-128-divisible shape exercises the padded + masked tail path
    x_odd = jax.random.normal(k4, (3, 7, 11), dtype=jnp.float32)
    t_odd = jax.random.bernoulli(k5, 0.3, (3, 7, 11)).astype(jnp.float32)
    out4a = jax.block_until_ready(
        focal_loss(x_odd, t_odd, alpha=0.5, gamma=2.0, logits=True, reduce=True))
    ref4a = _reference(x_odd, t_odd, 0.5, 2.0, True, True)
    assert jnp.allclose(out4a, ref4a, atol=1e-5, rtol=1e-5), "mismatch (mean, ragged)"
    out4b = jax.block_until_ready(
        focal_loss(x_odd, t_odd, alpha=0.5, gamma=2.0, logits=True, reduce=False))
    ref4b = _reference(x_odd, t_odd, 0.5, 2.0, True, False)
    assert out4b.shape == (3, 7, 11)
    assert jnp.allclose(out4b, ref4b, atol=1e-5, rtol=1e-5), "mismatch (map, ragged)"

    print("KERNEL_OK")
</pallas_src>

<mosaic_0001>
module attributes {stable_mosaic.version = 11 : i64} {
  func.func @_map_kernel(%arg0: i32, %arg1: memref<8x512xf32, #tpu.memory_space<vmem>>, %arg2: memref<8x512xf32, #tpu.memory_space<vmem>>, %arg3: memref<8x512xf32, #tpu.memory_space<vmem>>) attributes {dimension_semantics = [#tpu.dimension_semantics<parallel>], iteration_bounds = array<i64: 1>, scalar_prefetch = 0 : i64, scratch_operands = 0 : i64, tpu.core_type = #tpu.core_type<tc>, window_params = [{transform_indices = @transform_0, window_bounds = array<i64: 8, 512>}, {transform_indices = @transform_1, window_bounds = array<i64: 8, 512>}, {transform_indices = @transform_2, window_bounds = array<i64: 8, 512>}]} {
    %c0 = arith.constant 0 : index
    %c0_0 = arith.constant 0 : index
    %0 = vector.load %arg1[%c0, %c0_0] : memref<8x512xf32, #tpu.memory_space<vmem>>, vector<8x512xf32>
    %c0_1 = arith.constant 0 : index
    %c0_2 = arith.constant 0 : index
    %1 = vector.load %arg2[%c0_1, %c0_2] : memref<8x512xf32, #tpu.memory_space<vmem>>, vector<8x512xf32>
    %cst = arith.constant 0.000000e+00 : f32
    %2 = vector.broadcast %cst : f32 to vector<8x512xf32>
    %3 = arith.maximumf %0, %2 : vector<8x512xf32>
    %4 = arith.mulf %0, %1 : vector<8x512xf32>
    %5 = arith.subf %3, %4 : vector<8x512xf32>
    %6 = math.absf %0 : vector<8x512xf32>
    %cst_3 = arith.constant 0.000000e+00 : f32
    %7 = vector.broadcast %cst_3 : f32 to vector<8x512xf32>
    %8 = arith.subf %7, %6 : vector<8x512xf32>
    %9 = math.exp %8 : vector<8x512xf32>
    %10 = math.log1p %9 : vector<8x512xf32>
    %11 = arith.addf %5, %10 : vector<8x512xf32>
    %cst_4 = arith.constant 0.000000e+00 : f32
    %12 = vector.broadcast %cst_4 : f32 to vector<8x512xf32>
    %13 = arith.subf %12, %11 : vector<8x512xf32>
    %14 = math.exp %13 : vector<8x512xf32>
    %cst_5 = arith.constant 1.000000e+00 : f32
    %15 = vector.broadcast %cst_5 : f32 to vector<8x512xf32>
    %16 = arith.subf %15, %14 : vector<8x512xf32>
    %17 = arith.mulf %16, %16 : vector<8x512xf32>
    %cst_6 = arith.constant 2.500000e-01 : f32
    %18 = vector.broadcast %cst_6 : f32 to vector<8x512xf32>
    %19 = arith.mulf %18, %17 : vector<8x512xf32>
    %20 = arith.mulf %19, %11 : vector<8x512xf32>
    %c0_7 = arith.constant 0 : index
    %c0_8 = arith.constant 0 : index
    %21 = vector.load %arg3[%c0_7, %c0_8] : memref<8x512xf32, #tpu.memory_space<vmem>>, vector<8x512xf32>
    tpu.vector_store %arg3[%c0_7, %c0_8], %20 {strides = array<i32>} : memref<8x512xf32, #tpu.memory_space<vmem>>, vector<8x512xf32>,
    return
  }
  func.func @transform_0(%arg0: i32) -> (i32, i32) {
    %c0_i32 = arith.constant 0 : i32
    %c0_i32_0 = arith.constant 0 : i32
    return %arg0, %c0_i32 : i32, i32
  }
  func.func @transform_1(%arg0: i32) -> (i32, i32) {
    %c0_i32 = arith.constant 0 : i32
    %c0_i32_0 = arith.constant 0 : i32
    return %arg0, %c0_i32 : i32, i32
  }
  func.func @transform_2(%arg0: i32) -> (i32, i32) {
    %c0_i32 = arith.constant 0 : i32
    %c0_i32_0 = arith.constant 0 : i32
    return %arg0, %c0_i32 : i32, i32
  }
}

</mosaic_0001>

<bundles_post_ra>
// kernel: tpu_custom_call.1
= control target key start
LH: loop header
LB: loop body
LE: loop exit
PB: predicated region body
PF: predicated region fallthrough
CT: control target
= control target key end

     0   :  { %7 = vsyncpa [#allocation3], 0  ;;  %s338_s0 = inlined_call_operand.hbm [shape: f32[4,512], index: 0, kind: input, shape index: {}]   ;;  %s339_s1 = inlined_call_operand.hbm [shape: f32[4,512], index: 1, kind: input, shape index: {}]   ;;  %s340_s2 = inlined_call_operand.hbm [shape: f32[4,512], index: 2, kind: output, shape index: {}]  }
   0x1   :  { %8 = vsyncpa [#allocation6], 0 }
   0x2   :  { %9 = vsyncpa [#allocation4], 0 }
   0x3   :  { %13 = vsyncadd [#allocation3], 256  ;;  %s14_s11 = sshll.u32 %s338_s0, 4  ;;  %s279_s12 = smov [#allocation2]   ;;  %s15_s11 = int_to_ptr.hbm [resolvable:$true] %s14_s11 }
   0x4   :  { %s16_s13 = sshll.u32 %s279_s12, 4  ;;  %s280_s14 = smov 256   ;;  %s17_s13 = int_to_ptr.vmem [resolvable:$true] %s16_s13 }
   0x5   :  { %s281_s15 = smov 16  }
   0x6   :  { %22 = dma.hbm_to_vmem [thread:$0]  %s15_s11, 256, %s17_s13, [#allocation3], %s280_s14, %s280_s14, %s281_s15  }
   0x7   :  { %26 = vsyncadd [#allocation6], 256  ;;  %s27_s18 = sshll.u32 %s339_s1, 4  ;;  %s282_s19 = smov [#allocation5]   ;;  %s28_s18 = int_to_ptr.hbm [resolvable:$true] %s27_s18 }
   0x8   :  { %s29_s20 = sshll.u32 %s282_s19, 4  ;;  %s30_s20 = int_to_ptr.vmem [resolvable:$true] %s29_s20 }
   0x9   :  { %35 = dma.hbm_to_vmem [thread:$0]  %s28_s18, 256, %s30_s20, [#allocation6], %s280_s14, %s280_s14, %s281_s15  }
   0xa   :  { %273 = dma.done.wait [#allocation3], 512  }
   0xb   :  { %274 = vsyncadd [#allocation3], 4294966784 }
   0xc   :  { %275 = dma.done.wait [#allocation6], 512  }
   0xd   :  { %276 = vsyncadd [#allocation6], 4294966784  ;;  %v44_v0 = vld [vmem:[#allocation2] sm:$0xff]  ;;  %v311_v1 = vld [vmem:[#allocation2 + $0x8] sm:$0xff] }
   0xe   :  { %v64_v2 = vand.u32 2147483647, %v44_v0  ;;  %v313_v3 = vld [vmem:[#allocation2 + $0x10] sm:$0xff]  ;;  %v65_v4 = vand.u32 2147483647, %v311_v1  ;;  %v317_v7 = vld [vmem:[#allocation2 + $0x18] sm:$0xff] }
   0xf   :  { %v66_v5 = vand.u32 2147483647, %v313_v3  ;;  %v67_v11 = vand.u32 2147483647, %v317_v7  ;;  %v48_v17 = vld [vmem:[#allocation5] sm:$0xff]  ;;  %v52_v24 = vmax.f32 %v44_v0, 0.0 }
  0x10   :  { %v68_v6 = vsub.f32 0.0, %v64_v2  ;;  %v69_v8 = vsub.f32 0.0, %v65_v4  ;;  %v56_v25 = vmul.f32 %v48_v17, %v44_v0  ;;  %v49_v26 = vld [vmem:[#allocation5 + $0x8] sm:$0xff]  ;;  %v53_v30 = vmax.f32 %v311_v1, 0.0  ;;  %v50_v31 = vld [vmem:[#allocation5 + $0x10] sm:$0xff]  ;;  %v51_v39 = vld [vmem:[#allocation5 + $0x18] sm:$0xff] }
  0x11   :  { %v70_v9 = vsub.f32 0.0, %v66_v5  ;;  %v71_v14 = vsub.f32 0.0, %v67_v11  ;;  %v57_v36 = vmul.f32 %v49_v26, %v311_v1  ;;  %v54_v41 = vmax.f32 %v313_v3, 0.0 }
  0x12   :  { %v72_v10 = vmul.f32 1.442695, %v68_v6  ;;  %v74_v12 = vmul.f32 1.442695, %v69_v8  ;;  %v58_v42 = vmul.f32 %v50_v31, %v313_v3  ;;  %v60_v44 = vsub.f32 %v52_v24, %v56_v25 }
  0x13   :  { %v76_v13 = vmul.f32 1.442695, %v70_v9  ;;  %v78_v15 = vmul.f32 1.442695, %v71_v14  ;;  %v55_v46 = vmax.f32 %v317_v7, 0.0  ;;  %v59_v51 = vmul.f32 %v51_v39, %v317_v7 }
  0x14   :  { %177 = vpow2.f32 %v72_v10  ;;  %v61_v55 = vsub.f32 %v53_v30, %v57_v36  ;;  %v62_v59 = vsub.f32 %v54_v41, %v58_v42 }
  0x15   :  { %179 = vpow2.f32 %v74_v12  ;;  %v63_v2 = vsub.f32 %v55_v46, %v59_v51 }
  0x16   :  { %181 = vpow2.f32 %v76_v13 }
  0x17   :  { %183 = vpow2.f32 %v78_v15 }
  0x1a   :  { %v178_v16 = vpop.eup %177 }
  0x1b   :  { %v180_v18 = vpop.eup %179  ;;  %v80_v19 = vadd.f32 1.0, %v178_v16  ;;  %v83_v20 = vmul.f32 -0.5, %v178_v16  ;;  %v86_v33 = vand.u32 2147483647, %v178_v16 }
  0x1c   :  { %v182_v21 = vpop.eup %181  ;;  %v89_v22 = vadd.f32 1.0, %v180_v18  ;;  %v92_v23 = vmul.f32 -0.5, %v180_v18  ;;  %v95_v37 = vand.u32 2147483647, %v180_v18 }
  0x1d   :  { %185 = vlog2.f32 %v80_v19  ;;  %v98_v27 = vadd.f32 1.0, %v182_v21  ;;  %v184_v28 = vpop.eup %183  ;;  %v84_v29 = vadd.f32 1.0, %v83_v20  ;;  %v101_v32 = vmul.f32 -0.5, %v182_v21 }
  0x1e   :  { %187 = vlog2.f32 %v89_v22  ;;  %v93_v34 = vadd.f32 1.0, %v92_v23  ;;  %v107_v35 = vadd.f32 1.0, %v184_v28  ;;  %v110_v40 = vmul.f32 -0.5, %v184_v28 }
  0x1f   :  { %189 = vlog2.f32 %v98_v27  ;;  %v102_v38 = vadd.f32 1.0, %v101_v32  ;;  %v104_v43 = vand.u32 2147483647, %v182_v21  ;;  %v85_v45 = vmul.f32 %v178_v16, %v84_v29 }
  0x20   :  { %191 = vlog2.f32 %v107_v35  ;;  %v111_v47 = vadd.f32 1.0, %v110_v40  ;;  %vm325_vm0 = vcmp.lt.f32.partialorder %v86_v33, 0.0004427343  ;;  %v94_v50 = vmul.f32 %v180_v18, %v93_v34 }
  0x21   :  { %v113_v52 = vand.u32 2147483647, %v184_v28  ;;  %vm96_vm1 = vcmp.lt.f32.partialorder %v95_v37, 0.0004427343  ;;  %v103_v56 = vmul.f32 %v182_v21, %v102_v38  ;;  %vm105_vm2 = vcmp.lt.f32.partialorder %v104_v43, 0.0004427343 }
  0x22   :  { %v112_v62 = vmul.f32 %v184_v28, %v111_v47 }
  0x23   :  { %v186_v48 = vpop.eup %185  ;;  %vm114_vm3 = vcmp.lt.f32.partialorder %v113_v52, 0.0004427343 }
  0x24   :  { %v188_v53 = vpop.eup %187  ;;  %v82_v54 = vmul.f32 0.6931472, %v186_v48 }
  0x25   :  { %v190_v57 = vpop.eup %189  ;;  %v91_v58 = vmul.f32 0.6931472, %v188_v53 }
  0x26   :  { %v88_v60 = vsel %vm325_vm0, %v85_v45, %v82_v54  ;;  %v100_v61 = vmul.f32 0.6931472, %v190_v57  ;;  %v192_v63 = vpop.eup %191 }
  0x27   :  { %v116_v0 = vadd.f32 %v88_v60, %v60_v44  ;;  %v97_v1 = vsel %vm96_vm1, %v94_v50, %v91_v58  ;;  %v109_v5 = vmul.f32 0.6931472, %v192_v63 }
  0x28   :  { %v117_v3 = vadd.f32 %v97_v1, %v61_v55  ;;  %v106_v4 = vsel %vm105_vm2, %v103_v56, %v100_v61 }
  0x29   :  { %v120_v6 = vsub.f32 0.0, %v116_v0  ;;  %v118_v7 = vadd.f32 %v106_v4, %v62_v59  ;;  %v115_v9 = vsel %vm114_vm3, %v112_v62, %v109_v5 }
  0x2a   :  { %v121_v8 = vsub.f32 0.0, %v117_v3  ;;  %v119_v12 = vadd.f32 %v115_v9, %v63_v2 }
  0x2b   :  { %v124_v10 = vmul.f32 1.442695, %v120_v6  ;;  %v122_v11 = vsub.f32 0.0, %v118_v7 }
  0x2c   :  { %v126_v13 = vmul.f32 1.442695, %v121_v8  ;;  %v123_v15 = vsub.f32 0.0, %v119_v12 }
  0x2d   :  { %193 = vpow2.f32 %v124_v10  ;;  %v128_v14 = vmul.f32 1.442695, %v122_v11 }
  0x2e   :  { %195 = vpow2.f32 %v126_v13  ;;  %v130_v16 = vmul.f32 1.442695, %v123_v15 }
  0x2f   :  { %197 = vpow2.f32 %v128_v14 }
  0x30   :  { %199 = vpow2.f32 %v130_v16 }
  0x33   :  { %v194_v17 = vpop.eup %193 }
  0x34   :  { %v196_v18 = vpop.eup %195  ;;  %v132_v19 = vsub.f32 1.0, %v194_v17 }
  0x35   :  { %v198_v20 = vpop.eup %197  ;;  %v133_v21 = vsub.f32 1.0, %v196_v18 }
  0x36   :  { %v136_v22 = vmul.f32 %v132_v19, %v132_v19  ;;  %v134_v23 = vsub.f32 1.0, %v198_v20  ;;  %v200_v24 = vpop.eup %199 }
  0x37   :  { %v137_v25 = vmul.f32 %v133_v21, %v133_v21  ;;  %v135_v28 = vsub.f32 1.0, %v200_v24 }
  0x38   :  { %v140_v26 = vmul.f32 0.25, %v136_v22  ;;  %v138_v27 = vmul.f32 %v134_v23, %v134_v23 }
  0x39   :  { %v141_v29 = vmul.f32 0.25, %v137_v25  ;;  %v139_v32 = vmul.f32 %v135_v28, %v135_v28 }
  0x3a   :  { %v144_v30 = vmul.f32 %v140_v26, %v116_v0  ;;  %v142_v31 = vmul.f32 0.25, %v138_v27 }
  0x3b   :  { %v145_v33 = vmul.f32 %v141_v29, %v117_v3  ;;  %v143_v35 = vmul.f32 0.25, %v139_v32 }
  0x3c   :  { %148 = vst [vmem:[#allocation7] sm:$0xff] %v144_v30  ;;  %v146_v34 = vmul.f32 %v142_v31, %v118_v7 }
  0x3d   :  { %149 = vst [vmem:[#allocation7 + $0x8] sm:$0xff] %v145_v33  ;;  %v147_v36 = vmul.f32 %v143_v35, %v119_v12 }
  0x3e   :  { %150 = vst [vmem:[#allocation7 + $0x10] sm:$0xff] %v146_v34 }
  0x3f   :  { %151 = vst [vmem:[#allocation7 + $0x18] sm:$0xff] %v147_v36 }
  0x40   :  { %155 = vsyncadd [#allocation4], 256  ;;  %s158_s21 = sshll.u32 %s340_s2, 4  ;;  %s283_s22 = smov [#allocation7]   ;;  %s159_s21 = int_to_ptr.hbm [resolvable:$true] %s158_s21 }
  0x41   :  { %s156_s23 = sshll.u32 %s283_s22, 4  ;;  %s157_s23 = int_to_ptr.vmem [resolvable:$true] %s156_s23 }
  0x42   :  { %164 = dma.vmem_to_hbm [thread:$0]  %s157_s23, 256, %s159_s21, [#allocation4], %s280_s14, %s280_s14, %s281_s15  }
  0x43   :  { %277 = dma.done.wait [#allocation4], 512  }
  0x44   :  { %278 = vsyncadd [#allocation4], 4294966784 }
  0x45   :  { %169 = vsyncpa [#allocation3], 1 }
  0x46   :  { %170 = vsyncpa [#allocation6], 1 }
  0x47   :  { %171 = vsyncpa [#allocation4], 1 }

</bundles_post_ra>
